<compile_context>
chip_gen: v7x
topology: tpu7x:2x2x1
jax: 0.10.0
libtpu: 0.0.40
codegen_flags: <defaults>
</compile_context>

<pallas_src>
import jax
import jax.numpy as jnp
from jax import lax
from jax.experimental import pallas as pl
from jax.experimental.pallas import tpu as pltpu


def basic_block_kernel(x_ref, w1_ref, s1_ref, b1_ref, w2_ref, s2_ref, b2_ref,
                       o_ref, lhs_ref):
    """Fused conv1 -> bn1 -> relu -> conv2 -> bn2 -> +identity -> relu.

    x_ref  : (B, H, WC)   block of B images, rows of lane-packed (w, c), f32
    w*_ref : (3*WC, WC)   K-stacked lane-banded 3x3 conv weights, bf16
    s*/b*  : (1, WC)      folded BN scale / bias, tiled over W, f32
    o_ref  : (B, H, WC)   f32
    lhs_ref: (B*H, 3*WC)  f32 staging scratch for the fused-K matmul LHS
    """
    B, H, WC = x_ref.shape
    M = B * H

    def stage(src):  # src: (M, WC) f32 value
        # dy = 1 band: the rows themselves.
        lhs_ref[:, WC:2 * WC] = src
        # dy = 0 band: previous row (shift down by one).
        lhs_ref[1:M, 0:WC] = src[0:M - 1]
        # dy = 2 band: next row (shift up by one).
        lhs_ref[0:M - 1, 2 * WC:3 * WC] = src[1:M]
        # zero the H-halo rows at every image boundary (per-step, so it is
        # safe under megacore sharding of the parallel batch axis).
        zrow = jnp.zeros((1, WC), jnp.float32)
        for b in range(B):
            lhs_ref[b * H:b * H + 1, 0:WC] = zrow
            lhs_ref[b * H + H - 1:b * H + H, 2 * WC:3 * WC] = zrow

    x = x_ref[...].reshape(M, WC)

    # ---- conv1: single fused matmul, K = 3*WC, bf16 operands, f32 acc ----
    stage(x)
    acc = jnp.dot(lhs_ref[...].astype(jnp.bfloat16), w1_ref[...],
                  preferred_element_type=jnp.float32)

    # ---- bn1 (folded) + relu (f32 VPU math) ----
    out1 = jnp.maximum(acc * s1_ref[...] + b1_ref[...], 0.0)

    # ---- conv2: restage + single fused matmul ----
    stage(out1)
    acc2 = jnp.dot(lhs_ref[...].astype(jnp.bfloat16), w2_ref[...],
                   preferred_element_type=jnp.float32)

    # ---- bn2 (folded) + residual (from unpadded input) + relu ----
    out2 = acc2 * s2_ref[...] + b2_ref[...] + x
    o_ref[...] = jnp.maximum(out2, 0.0).reshape(B, H, WC)


def _band_weights(w_oihw, W):
    """(Cout, Cin, 3, 3) -> (3*W*Cin, W*Cout) K-stacked lane-banded matrix.

    band_dy[wi*Cin+ci, wo*Cout+co] = w[co, ci, dy, wi-wo+1] if 0<=wi-wo+1<=2
    else 0.  The band encodes both the dx taps and the zero padding in W.
    The three dy bands are concatenated along K (rows) and cast to bf16.
    """
    Cout, Cin, _, _ = w_oihw.shape
    wt = jnp.transpose(w_oihw, (2, 3, 1, 0))          # (kh, kw, Cin, Cout)
    wi = jnp.arange(W)[:, None]
    wo = jnp.arange(W)[None, :]
    dx = wi - wo + 1                                   # (W, W)
    valid = (dx >= 0) & (dx <= 2)
    dxc = jnp.clip(dx, 0, 2)
    mats = []
    for dy in range(3):
        blocks = wt[dy][dxc]                           # (W, W, Cin, Cout)
        blocks = jnp.where(valid[:, :, None, None], blocks, 0.0)
        mats.append(jnp.transpose(blocks, (0, 2, 1, 3)).reshape(W * Cin,
                                                                W * Cout))
    return jnp.concatenate(mats, axis=0).astype(jnp.bfloat16)


def _choose_block_b(N, H, target_m=256):
    """Largest per-step batch block that divides N, fills the MXU M rows,
    and keeps >= 2 grid steps when N > 1 (v7x megacore sharding)."""
    if N <= 1:
        return 1
    bb = max(1, min(N // 2, max(1, target_m // H)))
    while N % bb != 0:
        bb -= 1
    return bb


def basic_block(x_nchw, w1_oihw, g1, be1, rm1, rv1,
                w2_oihw, g2, be2, rm2, rv2, eps=1e-5):
    """Wrapper: NCHW in/out, BN folding, lane-banded bf16 weights, pallas_call."""
    N, Cin, H, W = x_nchw.shape
    Cout = w1_oihw.shape[0]
    assert Cin == Cout, "identity shortcut requires in_channel == out_channel"
    WC = W * Cout
    assert WC <= 1024, "lane-banded weights don't scale to large W*C; see TODO"

    block_b = _choose_block_b(N, H)
    grid = (N // block_b,)

    # NCHW -> NHWC -> lane-packed rows (N, H, W*C)  (reshape is layout-free)
    x = jnp.transpose(x_nchw, (0, 2, 3, 1)).astype(jnp.float32)
    x = x.reshape(N, H, WC)

    w1b = _band_weights(w1_oihw.astype(jnp.float32), W)   # (3*WC, WC) bf16
    w2b = _band_weights(w2_oihw.astype(jnp.float32), W)   # (3*WC, WC) bf16

    inv1 = 1.0 / jnp.sqrt(rv1 + eps)
    inv2 = 1.0 / jnp.sqrt(rv2 + eps)
    s1 = jnp.tile(g1 * inv1, W).reshape(1, WC)
    b1 = jnp.tile(be1 - rm1 * g1 * inv1, W).reshape(1, WC)
    s2 = jnp.tile(g2 * inv2, W).reshape(1, WC)
    b2 = jnp.tile(be2 - rm2 * g2 * inv2, W).reshape(1, WC)

    out = pl.pallas_call(
        basic_block_kernel,
        out_shape=jax.ShapeDtypeStruct((N, H, WC), jnp.float32),
        grid=grid,
        in_specs=[
            pl.BlockSpec((block_b, H, WC), lambda b: (b, 0, 0)),
            pl.BlockSpec((3 * WC, WC), lambda b: (0, 0)),
            pl.BlockSpec((1, WC), lambda b: (0, 0)),
            pl.BlockSpec((1, WC), lambda b: (0, 0)),
            pl.BlockSpec((3 * WC, WC), lambda b: (0, 0)),
            pl.BlockSpec((1, WC), lambda b: (0, 0)),
            pl.BlockSpec((1, WC), lambda b: (0, 0)),
        ],
        out_specs=pl.BlockSpec((block_b, H, WC), lambda b: (b, 0, 0)),
        scratch_shapes=[pltpu.VMEM((block_b * H, 3 * WC), jnp.float32)],
        compiler_params=pltpu.CompilerParams(
            dimension_semantics=("parallel",),
            vmem_limit_bytes=32 * 1024 * 1024,
        ),
    )(x, w1b, s1, b1, w2b, s2, b2)

    # (N, H, W*Cout) -> NCHW
    return jnp.transpose(out.reshape(N, H, W, Cout), (0, 3, 1, 2))


def basic_block_ref(x, w1, g1, be1, rm1, rv1, w2, g2, be2, rm2, rv2, eps=1e-5):
    """Pure-JAX NCHW reference (mirrors the PyTorch forward, eval-mode BN)."""
    dn = ("NCHW", "OIHW", "NCHW")

    def bn(o, g, be, rm, rv):
        s = (g / jnp.sqrt(rv + eps))[None, :, None, None]
        b = (be - rm * g / jnp.sqrt(rv + eps))[None, :, None, None]
        return o * s + b

    out = lax.conv_general_dilated(x, w1, (1, 1), "SAME", dimension_numbers=dn)
    out = jnp.maximum(bn(out, g1, be1, rm1, rv1), 0.0)
    out = lax.conv_general_dilated(out, w2, (1, 1), "SAME", dimension_numbers=dn)
    out = bn(out, g2, be2, rm2, rv2)
    return jnp.maximum(out + x, 0.0)


if __name__ == "__main__":
    key = jax.random.PRNGKey(0)
    ks = jax.random.split(key, 11)

    # Small test shape; N=8 so the batch-blocked grid has 2 parallel steps
    # of block_b=4 images each (M = block_b*H = 64 MXU rows per matmul).
    N, C, H, W = 8, 8, 16, 16          # in_channel == out_channel, stride=1
    x = jax.random.normal(ks[0], (N, C, H, W), jnp.float32)

    # Deterministic synthetic parameters (shapes per BasicBlock.__init__)
    w1 = 0.1 * jax.random.normal(ks[1], (C, C, 3, 3), jnp.float32)
    w2 = 0.1 * jax.random.normal(ks[2], (C, C, 3, 3), jnp.float32)
    g1 = 1.0 + 0.1 * jax.random.normal(ks[3], (C,), jnp.float32)
    be1 = 0.1 * jax.random.normal(ks[4], (C,), jnp.float32)
    rm1 = 0.1 * jax.random.normal(ks[5], (C,), jnp.float32)
    rv1 = 1.0 + 0.1 * jnp.abs(jax.random.normal(ks[6], (C,), jnp.float32))
    g2 = 1.0 + 0.1 * jax.random.normal(ks[7], (C,), jnp.float32)
    be2 = 0.1 * jax.random.normal(ks[8], (C,), jnp.float32)
    rm2 = 0.1 * jax.random.normal(ks[9], (C,), jnp.float32)
    rv2 = 1.0 + 0.1 * jnp.abs(jax.random.normal(ks[10], (C,), jnp.float32))

    out = basic_block(x, w1, g1, be1, rm1, rv1, w2, g2, be2, rm2, rv2)
    out = jax.block_until_ready(out)

    ref = basic_block_ref(x, w1, g1, be1, rm1, rv1, w2, g2, be2, rm2, rv2)
    assert out.shape == (N, C, H, W)
    # bf16 MXU operands (f32 accumulate) -> relax tolerance vs the f32 ref.
    assert jnp.allclose(out, ref, atol=5e-2, rtol=5e-2), \
        f"max abs err = {jnp.max(jnp.abs(out - ref))}"

    print("KERNEL_OK")
</pallas_src>

<mosaic_0001>
module attributes {stable_mosaic.version = 11 : i64} {
  func.func @basic_block_kernel(%arg0: i32, %arg1: memref<4x16x128xf32, #tpu.memory_space<vmem>>, %arg2: memref<384x128xbf16, #tpu.memory_space<vmem>>, %arg3: memref<1x128xf32, #tpu.memory_space<vmem>>, %arg4: memref<1x128xf32, #tpu.memory_space<vmem>>, %arg5: memref<384x128xbf16, #tpu.memory_space<vmem>>, %arg6: memref<1x128xf32, #tpu.memory_space<vmem>>, %arg7: memref<1x128xf32, #tpu.memory_space<vmem>>, %arg8: memref<4x16x128xf32, #tpu.memory_space<vmem>>, %arg9: memref<64x384xf32, #tpu.memory_space<vmem>>) attributes {dimension_semantics = [#tpu.dimension_semantics<parallel>], iteration_bounds = array<i64: 2>, scalar_prefetch = 0 : i64, scratch_operands = 1 : i64, tpu.core_type = #tpu.core_type<tc>, window_params = [{transform_indices = @transform_0, window_bounds = array<i64: 4, 16, 128>}, {pipeline_mode = #tpu.pipeline_mode<synchronous>, transform_indices = @transform_1, window_bounds = array<i64: 384, 128>}, {pipeline_mode = #tpu.pipeline_mode<synchronous>, transform_indices = @transform_2, window_bounds = array<i64: 1, 128>}, {pipeline_mode = #tpu.pipeline_mode<synchronous>, transform_indices = @transform_3, window_bounds = array<i64: 1, 128>}, {pipeline_mode = #tpu.pipeline_mode<synchronous>, transform_indices = @transform_4, window_bounds = array<i64: 384, 128>}, {pipeline_mode = #tpu.pipeline_mode<synchronous>, transform_indices = @transform_5, window_bounds = array<i64: 1, 128>}, {pipeline_mode = #tpu.pipeline_mode<synchronous>, transform_indices = @transform_6, window_bounds = array<i64: 1, 128>}, {transform_indices = @transform_7, window_bounds = array<i64: 4, 16, 128>}]} {
    %c0 = arith.constant 0 : index
    %c0_0 = arith.constant 0 : index
    %c0_1 = arith.constant 0 : index
    %0 = vector.load %arg1[%c0, %c0_0, %c0_1] : memref<4x16x128xf32, #tpu.memory_space<vmem>>, vector<4x16x128xf32>
    %1 = vector.shape_cast %0 : vector<4x16x128xf32> to vector<64x128xf32>
    %c0_2 = arith.constant 0 : index
    %c128 = arith.constant 128 : index
    %2 = vector.load %arg9[%c0_2, %c128] : memref<64x384xf32, #tpu.memory_space<vmem>>, vector<64x128xf32>
    tpu.vector_store %arg9[%c0_2, %c128], %1 {strides = array<i32>} : memref<64x384xf32, #tpu.memory_space<vmem>>, vector<64x128xf32>,
    %3 = vector.extract_strided_slice %1 {offsets = [0, 0], sizes = [63, 128], strides = [1, 1]} : vector<64x128xf32> to vector<63x128xf32>
    %c1 = arith.constant 1 : index
    %c0_3 = arith.constant 0 : index
    %4 = vector.load %arg9[%c1, %c0_3] : memref<64x384xf32, #tpu.memory_space<vmem>>, vector<63x128xf32>
    tpu.vector_store %arg9[%c1, %c0_3], %3 {strides = array<i32>} : memref<64x384xf32, #tpu.memory_space<vmem>>, vector<63x128xf32>,
    %5 = vector.extract_strided_slice %1 {offsets = [1, 0], sizes = [63, 128], strides = [1, 1]} : vector<64x128xf32> to vector<63x128xf32>
    %c0_4 = arith.constant 0 : index
    %c256 = arith.constant 256 : index
    %6 = vector.load %arg9[%c0_4, %c256] : memref<64x384xf32, #tpu.memory_space<vmem>>, vector<63x128xf32>
    tpu.vector_store %arg9[%c0_4, %c256], %5 {strides = array<i32>} : memref<64x384xf32, #tpu.memory_space<vmem>>, vector<63x128xf32>,
    %cst = arith.constant 0.000000e+00 : f32
    %7 = vector.broadcast %cst : f32 to vector<1x128xf32>
    %c0_5 = arith.constant 0 : index
    %c0_6 = arith.constant 0 : index
    %8 = vector.load %arg9[%c0_5, %c0_6] : memref<64x384xf32, #tpu.memory_space<vmem>>, vector<1x128xf32>
    tpu.vector_store %arg9[%c0_5, %c0_6], %7 {strides = array<i32>} : memref<64x384xf32, #tpu.memory_space<vmem>>, vector<1x128xf32>,
    %c15 = arith.constant 15 : index
    %c256_7 = arith.constant 256 : index
    %9 = vector.load %arg9[%c15, %c256_7] : memref<64x384xf32, #tpu.memory_space<vmem>>, vector<1x128xf32>
    tpu.vector_store %arg9[%c15, %c256_7], %7 {strides = array<i32>} : memref<64x384xf32, #tpu.memory_space<vmem>>, vector<1x128xf32>,
    %c16 = arith.constant 16 : index
    %c0_8 = arith.constant 0 : index
    %10 = vector.load %arg9[%c16, %c0_8] : memref<64x384xf32, #tpu.memory_space<vmem>>, vector<1x128xf32>
    tpu.vector_store %arg9[%c16, %c0_8], %7 {strides = array<i32>} : memref<64x384xf32, #tpu.memory_space<vmem>>, vector<1x128xf32>,
    %c31 = arith.constant 31 : index
    %c256_9 = arith.constant 256 : index
    %11 = vector.load %arg9[%c31, %c256_9] : memref<64x384xf32, #tpu.memory_space<vmem>>, vector<1x128xf32>
    tpu.vector_store %arg9[%c31, %c256_9], %7 {strides = array<i32>} : memref<64x384xf32, #tpu.memory_space<vmem>>, vector<1x128xf32>,
    %c32 = arith.constant 32 : index
    %c0_10 = arith.constant 0 : index
    %12 = vector.load %arg9[%c32, %c0_10] : memref<64x384xf32, #tpu.memory_space<vmem>>, vector<1x128xf32>
    tpu.vector_store %arg9[%c32, %c0_10], %7 {strides = array<i32>} : memref<64x384xf32, #tpu.memory_space<vmem>>, vector<1x128xf32>,
    %c47 = arith.constant 47 : index
    %c256_11 = arith.constant 256 : index
    %13 = vector.load %arg9[%c47, %c256_11] : memref<64x384xf32, #tpu.memory_space<vmem>>, vector<1x128xf32>
    tpu.vector_store %arg9[%c47, %c256_11], %7 {strides = array<i32>} : memref<64x384xf32, #tpu.memory_space<vmem>>, vector<1x128xf32>,
    %c48 = arith.constant 48 : index
    %c0_12 = arith.constant 0 : index
    %14 = vector.load %arg9[%c48, %c0_12] : memref<64x384xf32, #tpu.memory_space<vmem>>, vector<1x128xf32>
    tpu.vector_store %arg9[%c48, %c0_12], %7 {strides = array<i32>} : memref<64x384xf32, #tpu.memory_space<vmem>>, vector<1x128xf32>,
    %c63 = arith.constant 63 : index
    %c256_13 = arith.constant 256 : index
    %15 = vector.load %arg9[%c63, %c256_13] : memref<64x384xf32, #tpu.memory_space<vmem>>, vector<1x128xf32>
    tpu.vector_store %arg9[%c63, %c256_13], %7 {strides = array<i32>} : memref<64x384xf32, #tpu.memory_space<vmem>>, vector<1x128xf32>,
    %c0_14 = arith.constant 0 : index
    %c0_15 = arith.constant 0 : index
    %16 = vector.load %arg9[%c0_14, %c0_15] : memref<64x384xf32, #tpu.memory_space<vmem>>, vector<64x384xf32>
    %17 = arith.truncf %16 : vector<64x384xf32> to vector<64x384xbf16>
    %c0_16 = arith.constant 0 : index
    %c0_17 = arith.constant 0 : index
    %18 = vector.load %arg2[%c0_16, %c0_17] : memref<384x128xbf16, #tpu.memory_space<vmem>>, vector<384x128xbf16>
    %cst_18 = arith.constant dense<0.000000e+00> : vector<64x128xf32>
    %19 = tpu.matmul %17, %18, %cst_18 {dimension_numbers = #tpu.dot_dimension_numbers<[1], [0], [0], [1], [0, 0, 1, 1], [], []>} : vector<64x384xbf16>, vector<384x128xbf16>, vector<64x128xf32> -> vector<64x128xf32>
    %c0_19 = arith.constant 0 : index
    %c0_20 = arith.constant 0 : index
    %20 = vector.load %arg3[%c0_19, %c0_20] : memref<1x128xf32, #tpu.memory_space<vmem>>, vector<1x128xf32>
    %21 = vector.broadcast %20 : vector<1x128xf32> to vector<64x128xf32>
    %22 = arith.mulf %19, %21 : vector<64x128xf32>
    %c0_21 = arith.constant 0 : index
    %c0_22 = arith.constant 0 : index
    %23 = vector.load %arg4[%c0_21, %c0_22] : memref<1x128xf32, #tpu.memory_space<vmem>>, vector<1x128xf32>
    %24 = vector.broadcast %23 : vector<1x128xf32> to vector<64x128xf32>
    %25 = arith.addf %22, %24 : vector<64x128xf32>
    %cst_23 = arith.constant 0.000000e+00 : f32
    %26 = vector.broadcast %cst_23 : f32 to vector<64x128xf32>
    %27 = arith.maximumf %25, %26 : vector<64x128xf32>
    %c0_24 = arith.constant 0 : index
    %c128_25 = arith.constant 128 : index
    %28 = vector.load %arg9[%c0_24, %c128_25] : memref<64x384xf32, #tpu.memory_space<vmem>>, vector<64x128xf32>
    tpu.vector_store %arg9[%c0_24, %c128_25], %27 {strides = array<i32>} : memref<64x384xf32, #tpu.memory_space<vmem>>, vector<64x128xf32>,
    %29 = vector.extract_strided_slice %27 {offsets = [0, 0], sizes = [63, 128], strides = [1, 1]} : vector<64x128xf32> to vector<63x128xf32>
    %c1_26 = arith.constant 1 : index
    %c0_27 = arith.constant 0 : index
    %30 = vector.load %arg9[%c1_26, %c0_27] : memref<64x384xf32, #tpu.memory_space<vmem>>, vector<63x128xf32>
    tpu.vector_store %arg9[%c1_26, %c0_27], %29 {strides = array<i32>} : memref<64x384xf32, #tpu.memory_space<vmem>>, vector<63x128xf32>,
    %31 = vector.extract_strided_slice %27 {offsets = [1, 0], sizes = [63, 128], strides = [1, 1]} : vector<64x128xf32> to vector<63x128xf32>
    %c0_28 = arith.constant 0 : index
    %c256_29 = arith.constant 256 : index
    %32 = vector.load %arg9[%c0_28, %c256_29] : memref<64x384xf32, #tpu.memory_space<vmem>>, vector<63x128xf32>
    tpu.vector_store %arg9[%c0_28, %c256_29], %31 {strides = array<i32>} : memref<64x384xf32, #tpu.memory_space<vmem>>, vector<63x128xf32>,
    %cst_30 = arith.constant 0.000000e+00 : f32
    %33 = vector.broadcast %cst_30 : f32 to vector<1x128xf32>
    %c0_31 = arith.constant 0 : index
    %c0_32 = arith.constant 0 : index
    %34 = vector.load %arg9[%c0_31, %c0_32] : memref<64x384xf32, #tpu.memory_space<vmem>>, vector<1x128xf32>
    tpu.vector_store %arg9[%c0_31, %c0_32], %33 {strides = array<i32>} : memref<64x384xf32, #tpu.memory_space<vmem>>, vector<1x128xf32>,
    %c15_33 = arith.constant 15 : index
    %c256_34 = arith.constant 256 : index
    %35 = vector.load %arg9[%c15_33, %c256_34] : memref<64x384xf32, #tpu.memory_space<vmem>>, vector<1x128xf32>
    tpu.vector_store %arg9[%c15_33, %c256_34], %33 {strides = array<i32>} : memref<64x384xf32, #tpu.memory_space<vmem>>, vector<1x128xf32>,
    %c16_35 = arith.constant 16 : index
    %c0_36 = arith.constant 0 : index
    %36 = vector.load %arg9[%c16_35, %c0_36] : memref<64x384xf32, #tpu.memory_space<vmem>>, vector<1x128xf32>
    tpu.vector_store %arg9[%c16_35, %c0_36], %33 {strides = array<i32>} : memref<64x384xf32, #tpu.memory_space<vmem>>, vector<1x128xf32>,
    %c31_37 = arith.constant 31 : index
    %c256_38 = arith.constant 256 : index
    %37 = vector.load %arg9[%c31_37, %c256_38] : memref<64x384xf32, #tpu.memory_space<vmem>>, vector<1x128xf32>
    tpu.vector_store %arg9[%c31_37, %c256_38], %33 {strides = array<i32>} : memref<64x384xf32, #tpu.memory_space<vmem>>, vector<1x128xf32>,
    %c32_39 = arith.constant 32 : index
    %c0_40 = arith.constant 0 : index
    %38 = vector.load %arg9[%c32_39, %c0_40] : memref<64x384xf32, #tpu.memory_space<vmem>>, vector<1x128xf32>
    tpu.vector_store %arg9[%c32_39, %c0_40], %33 {strides = array<i32>} : memref<64x384xf32, #tpu.memory_space<vmem>>, vector<1x128xf32>,
    %c47_41 = arith.constant 47 : index
    %c256_42 = arith.constant 256 : index
    %39 = vector.load %arg9[%c47_41, %c256_42] : memref<64x384xf32, #tpu.memory_space<vmem>>, vector<1x128xf32>
    tpu.vector_store %arg9[%c47_41, %c256_42], %33 {strides = array<i32>} : memref<64x384xf32, #tpu.memory_space<vmem>>, vector<1x128xf32>,
    %c48_43 = arith.constant 48 : index
    %c0_44 = arith.constant 0 : index
    %40 = vector.load %arg9[%c48_43, %c0_44] : memref<64x384xf32, #tpu.memory_space<vmem>>, vector<1x128xf32>
    tpu.vector_store %arg9[%c48_43, %c0_44], %33 {strides = array<i32>} : memref<64x384xf32, #tpu.memory_space<vmem>>, vector<1x128xf32>,
    %c63_45 = arith.constant 63 : index
    %c256_46 = arith.constant 256 : index
    %41 = vector.load %arg9[%c63_45, %c256_46] : memref<64x384xf32, #tpu.memory_space<vmem>>, vector<1x128xf32>
    tpu.vector_store %arg9[%c63_45, %c256_46], %33 {strides = array<i32>} : memref<64x384xf32, #tpu.memory_space<vmem>>, vector<1x128xf32>,
    %c0_47 = arith.constant 0 : index
    %c0_48 = arith.constant 0 : index
    %42 = vector.load %arg9[%c0_47, %c0_48] : memref<64x384xf32, #tpu.memory_space<vmem>>, vector<64x384xf32>
    %43 = arith.truncf %42 : vector<64x384xf32> to vector<64x384xbf16>
    %c0_49 = arith.constant 0 : index
    %c0_50 = arith.constant 0 : index
    %44 = vector.load %arg5[%c0_49, %c0_50] : memref<384x128xbf16, #tpu.memory_space<vmem>>, vector<384x128xbf16>
    %cst_51 = arith.constant dense<0.000000e+00> : vector<64x128xf32>
    %45 = tpu.matmul %43, %44, %cst_51 {dimension_numbers = #tpu.dot_dimension_numbers<[1], [0], [0], [1], [0, 0, 1, 1], [], []>} : vector<64x384xbf16>, vector<384x128xbf16>, vector<64x128xf32> -> vector<64x128xf32>
    %c0_52 = arith.constant 0 : index
    %c0_53 = arith.constant 0 : index
    %46 = vector.load %arg6[%c0_52, %c0_53] : memref<1x128xf32, #tpu.memory_space<vmem>>, vector<1x128xf32>
    %47 = vector.broadcast %46 : vector<1x128xf32> to vector<64x128xf32>
    %48 = arith.mulf %45, %47 : vector<64x128xf32>
    %c0_54 = arith.constant 0 : index
    %c0_55 = arith.constant 0 : index
    %49 = vector.load %arg7[%c0_54, %c0_55] : memref<1x128xf32, #tpu.memory_space<vmem>>, vector<1x128xf32>
    %50 = vector.broadcast %49 : vector<1x128xf32> to vector<64x128xf32>
    %51 = arith.addf %48, %50 : vector<64x128xf32>
    %52 = arith.addf %51, %1 : vector<64x128xf32>
    %cst_56 = arith.constant 0.000000e+00 : f32
    %53 = vector.broadcast %cst_56 : f32 to vector<64x128xf32>
    %54 = arith.maximumf %52, %53 : vector<64x128xf32>
    %55 = vector.shape_cast %54 : vector<64x128xf32> to vector<4x16x128xf32>
    %c0_57 = arith.constant 0 : index
    %c0_58 = arith.constant 0 : index
    %c0_59 = arith.constant 0 : index
    %56 = vector.load %arg8[%c0_57, %c0_58, %c0_59] : memref<4x16x128xf32, #tpu.memory_space<vmem>>, vector<4x16x128xf32>
    tpu.vector_store %arg8[%c0_57, %c0_58, %c0_59], %55 {strides = array<i32>} : memref<4x16x128xf32, #tpu.memory_space<vmem>>, vector<4x16x128xf32>,
    return
  }
  func.func @transform_0(%arg0: i32) -> (i32, i32, i32) {
    %c0_i32 = arith.constant 0 : i32
    %c0_i32_0 = arith.constant 0 : i32
    %c0_i32_1 = arith.constant 0 : i32
    return %arg0, %c0_i32, %c0_i32_0 : i32, i32, i32
  }
  func.func @transform_1(%arg0: i32) -> (i32, i32) {
    %c0_i32 = arith.constant 0 : i32
    %c0_i32_0 = arith.constant 0 : i32
    %c0_i32_1 = arith.constant 0 : i32
    return %c0_i32, %c0_i32_0 : i32, i32
  }
  func.func @transform_2(%arg0: i32) -> (i32, i32) {
    %c0_i32 = arith.constant 0 : i32
    %c0_i32_0 = arith.constant 0 : i32
    %c0_i32_1 = arith.constant 0 : i32
    return %c0_i32, %c0_i32_0 : i32, i32
  }
  func.func @transform_3(%arg0: i32) -> (i32, i32) {
    %c0_i32 = arith.constant 0 : i32
    %c0_i32_0 = arith.constant 0 : i32
    %c0_i32_1 = arith.constant 0 : i32
    return %c0_i32, %c0_i32_0 : i32, i32
  }
  func.func @transform_4(%arg0: i32) -> (i32, i32) {
    %c0_i32 = arith.constant 0 : i32
    %c0_i32_0 = arith.constant 0 : i32
    %c0_i32_1 = arith.constant 0 : i32
    return %c0_i32, %c0_i32_0 : i32, i32
  }
  func.func @transform_5(%arg0: i32) -> (i32, i32) {
    %c0_i32 = arith.constant 0 : i32
    %c0_i32_0 = arith.constant 0 : i32
    %c0_i32_1 = arith.constant 0 : i32
    return %c0_i32, %c0_i32_0 : i32, i32
  }
  func.func @transform_6(%arg0: i32) -> (i32, i32) {
    %c0_i32 = arith.constant 0 : i32
    %c0_i32_0 = arith.constant 0 : i32
    %c0_i32_1 = arith.constant 0 : i32
    return %c0_i32, %c0_i32_0 : i32, i32
  }
  func.func @transform_7(%arg0: i32) -> (i32, i32, i32) {
    %c0_i32 = arith.constant 0 : i32
    %c0_i32_0 = arith.constant 0 : i32
    %c0_i32_1 = arith.constant 0 : i32
    return %arg0, %c0_i32, %c0_i32_0 : i32, i32, i32
  }
}

</mosaic_0001>

<bundles_post_ra>
// kernel: tpu_custom_call.1
= control target key start
LH: loop header
LB: loop body
LE: loop exit
PB: predicated region body
PF: predicated region fallthrough
CT: control target
= control target key end

     0   :  { %12 = vsyncpa [#allocation4], 0  ;;  %s2372_s0 = inlined_call_operand.hbm [shape: f32[8,16,128], index: 0, kind: input, shape index: {}]   ;;  %s2373_s1 = inlined_call_operand.hbm [shape: bf16[384,128], index: 1, kind: input, shape index: {}]   ;;  %s2374_s2 = inlined_call_operand.vmem [shape: f32[1,128], index: 2, kind: input, shape index: {}]   ;;  %s2375_s3 = inlined_call_operand.vmem [shape: f32[1,128], index: 3, kind: input, shape index: {}]   ;;  %s2376_s4 = inlined_call_operand.hbm [shape: bf16[384,128], index: 4, kind: input, shape index: {}]   ;;  %s2377_s5 = inlined_call_operand.vmem [shape: f32[1,128], index: 5, kind: input, shape index: {}]   ;;  %s2378_s6 = inlined_call_operand.vmem [shape: f32[1,128], index: 6, kind: input, shape index: {}]   ;;  %s2379_s7 = inlined_call_operand.hbm [shape: f32[8,16,128], index: 7, kind: output, shape index: {}]  }
   0x1   :  { %14 = vsyncpa [#allocation4 + $0x1], 0 }
   0x2   :  { %15 = vsyncpa [#allocation7], 0 }
   0x3   :  { %16 = vsyncpa [#allocation5], 0 }
   0x4   :  { %18 = vsyncpa [#allocation5 + $0x1], 0  ;;  %s1986_s24 = smov 0   ;;  %s1988_s25 = smov 0  }
   0x5   :  { %s1990_s26 = smov 0   ;;  %s1992_s27 = smov 0  }
   0x6 LB: > { %s2007_s28 = sadd.s32 4294967295, %s1933_s27   ;;  %s1427_s29 = sadd.s32 4294967294, %s1933_s27   ;;  %s1933_s27 = sphi %s1992_s27, %s2399_s27   ;;  %s1929_s26 = sphi %s1990_s26, %s2398_s26   ;;  %s1925_s25 = sphi %s1988_s25, %s2397_s25   ;;  %s1921_s24 = sphi %s1986_s24, %s2396_s24  }
   0x7   : > { %p44_p0 = scmp.ne.s32.totalorder %s1925_s25, %s1921_s24  ;;  %p2380_p1 = scmp.eq.s32.totalorder %s2007_s28, 0 }
   0x8   : > { %p200_p3 = scmp.eq.s32.totalorder %s1427_s29, 1  ;;  %p1428_p5 = scmp.ge.s32.totalorder %s1933_s27, 1 }
   0x9   : > { %p2016_p4 = por %p2380_p1, %p44_p0  ;;  %p207_p7 = scmp.lt.s32.totalorder %s1933_s27, 3 }
   0xa   : > { %p2021_p6 = por %p200_p3, %p44_p0  ;;  %s1935_s10 = smov [#allocation6]  }
   0xb   : > { %s2383_s30 = scalar_select %p2016_p4, 1, 0 }
   0xc   : > { %s2384_s8 = scalar_select %p2021_p6, 1, 0 }
   0xd   : > { %p2026_p8 = pnand %p1428_p5, %p207_p7  ;;  %s219_s11 = sshll.u32 %s1935_s10, 4  ;;  %s2030_s11 = int_to_ptr.vmem [resolvable:$true] %s219_s11 }
   0xe   : > { %s1936_s13 = smov [#allocation8]   ;;  %s1777_s17 = scalar_lea.hbm %s2373_s1, 3072 }
   0xf   : > { %p1667_p9 = pneg %p2026_p8  ;;  %s238_s14 = sshll.u32 %s1936_s13, 4  ;;  %s2041_s14 = int_to_ptr.vmem [resolvable:$true] %s238_s14 }
  0x10   : > { %p1778_p12 = scmp.ne.s32.totalorder %s2373_s1, %s1777_s17  ;;  %p1784_p5 = scmp.lt.u32.totalorder %s1777_s17, %s2373_s1 }
  0x11   : > { %p2037_p11 = pnand %p1667_p9, %p2380_p1 }
  0x13   : > { %p1779_p13 = pneg %p2037_p11 }
  0x15   : > { %p1780_p0 = pnand %p1779_p13, %p1778_p12 }
  0x17   : > { %p1781_p3 = pneg %p1780_p0 }
  0x19   : > { %p1786_p7 = pnand %p1784_p5, %p1781_p3 }
  0x1b   : > { %1789 = shalt.err (!%p1786_p7)
}
  0x1c   : > { %s1790_s22 = scalar_lea.vmem %s2030_s11, 3072  ;;  %p1798_p2 = scmp.lt.s32.totalorder %s2030_s11, %s2030_s11 }
  0x1d   : > { %p1791_p9 = scmp.ne.s32.totalorder %s2030_s11, %s1790_s22  ;;  %p1799_p12 = scmp.lt.s32.totalorder %s1790_s22, %s1790_s22 }
  0x1f   : > { %p1793_p10 = pnand %p1791_p9, %p1779_p13  ;;  %p1800_p0 = por %p1799_p12, %p1798_p2 }
  0x21   : > { %p1794_p1 = pneg %p1793_p10 }
  0x23   : > { %p1801_p6 = pnand %p1800_p0, %p1794_p1 }
  0x25   : > { %1804 = shalt.err (!%p1801_p6)
}
  0x26   : > { %s1937_s23 = smov 64   ;;  %s1938_s29 = smov 4  }
  0x27   : > { %1670 = dma.hbm_to_vmem [thread:$0]  (!%p2037_p11), %s2373_s1, 3072, %s2030_s11, [#allocation7], %s1937_s23, %s1937_s23, %s1938_s29  }
  0x28   : > { %s1805_s17 = scalar_lea.hbm %s2376_s4, 3072 }
  0x29   : > { %p1806_p2 = scmp.ne.s32.totalorder %s2376_s4, %s1805_s17  ;;  %p1812_p10 = scmp.lt.u32.totalorder %s1805_s17, %s2376_s4 }
  0x2b   : > { %p1808_p1 = pnand %p1806_p2, %p1779_p13 }
  0x2d   : > { %p1809_p6 = pneg %p1808_p1 }
  0x2f   : > { %p1814_p3 = pnand %p1812_p10, %p1809_p6 }
  0x31   : > { %1817 = shalt.err (!%p1814_p3)
}
  0x32   : > { %s1818_s11 = scalar_lea.vmem %s2041_s14, 3072  ;;  %p1826_p12 = scmp.lt.s32.totalorder %s2041_s14, %s2041_s14 }
  0x33   : > { %p1819_p5 = scmp.ne.s32.totalorder %s2041_s14, %s1818_s11  ;;  %p1827_p0 = scmp.lt.s32.totalorder %s1818_s11, %s1818_s11 }
  0x35   : > { %p1821_p7 = pnand %p1819_p5, %p1779_p13  ;;  %p1828_p2 = por %p1827_p0, %p1826_p12 }
  0x37   : > { %p1822_p9 = pneg %p1821_p7 }
  0x39   : > { %p1829_p1 = pnand %p1828_p2, %p1822_p9 }
  0x3b   : > { %1832 = shalt.err (!%p1829_p1)
}
  0x3c   : > { %1673 = dma.hbm_to_vmem [thread:$0]  (!%p2037_p11), %s2376_s4, 3072, %s2041_s14, [#allocation7], %s1937_s23, %s1937_s23, %s1938_s29  }
  0x3d   : > { %s2096_s13 = sadd.s32 1, %s1933_s27   ;;  %s31_s12 = sadd.s32 1, %s1929_s26 }
  0x3e   : > { %s28_s15 = ssub.s32 %s1933_s27, %s2096_s13  ;;  %p38_p13 = scmp.ne.s32.totalorder %s1929_s26, %s1925_s25 }
  0x3f   : > { %p29_p6 = scmp.eq.s32.totalorder %s28_s15, 0  ;;  %p39_p10 = scmp.eq.s32.totalorder %s1933_s27, 0 }
  0x40   : > { %p2387_p3 = scmp.eq.s32.totalorder %s2007_s28, 1  ;;  %p1684_p7 = scmp.lt.s32.totalorder %s1933_s27, 2 }
  0x41   : > { %s2112_s17 = scalar_select %p29_p6, %s1929_s26, %s31_s12  }
  0x42   : > { %p2106_p5 = por %p2387_p3, %p38_p13  ;;  %p40_p9 = por %p39_p10, %p38_p13 }
  0x43   : > { %s258_s18 = sand.u32 1, %s1929_s26   ;;  %s1500_s14 = sshll.u32 %s1933_s27, 10 }
  0x44   : > { %s2388_s16 = scalar_select %p2106_p5, 1, 0 }
  0x45   : > { %s1432_s19 = sshll.u32 %s258_s18, 6  ;;  %s2119_s20 = scalar_lea.hbm %s2372_s0, %s1500_s14 }
  0x46   : > { %s262_s21 = scalar_lea.vmem [#allocation3], %s1432_s19  ;;  %p2123_p11 = pnand %p1684_p7, %p40_p9 }
  0x47   : > { %s270_s11 = sshll.u32 %s262_s21, 4  ;;  %s2127_s10 = scalar_lea.sflag [#allocation4], %s258_s18  ;;  %s2121_s11 = int_to_ptr.vmem [resolvable:$true] %s270_s11 }
  0x48   : > { %s1833_s12 = scalar_lea.hbm %s2119_s20, 1024  ;;  %p1835_p0 = pneg %p2123_p11 }
  0x49   : > { %p1834_p12 = scmp.ne.s32.totalorder %s2119_s20, %s1833_s12  ;;  %s1838_s14 = scalar_lea.hbm %s2372_s0, 2048 }
  0x4a   : > { %p1839_p13 = scmp.lt.u32.totalorder %s2119_s20, %s2372_s0  ;;  %p1840_p6 = scmp.lt.u32.totalorder %s1838_s14, %s1833_s12 }
  0x4b   : > { %p1836_p2 = pnand %p1835_p0, %p1834_p12  ;;  %p1842_p3 = scmp.lt.u32.totalorder %s1833_s12, %s2119_s20 }
  0x4c   : > { %p1841_p10 = por %p1840_p6, %p1839_p13 }
  0x4d   : > { %p1837_p1 = pneg %p1836_p2 }
  0x4e   : > { %p1843_p7 = por %p1842_p3, %p1841_p10 }
  0x50   : > { %p1844_p9 = pnand %p1843_p7, %p1837_p1 }
  0x52   : > { %1847 = shalt.err (!%p1844_p9)
}
  0x53   : > { %s1848_s18 = scalar_lea.vmem %s2121_s11, 1024  ;;  %s1939_s21 = smov [#allocation3]  }
  0x54   : > { %p1849_p12 = scmp.ne.s32.totalorder %s2121_s11, %s1848_s18  ;;  %s1853_s15 = sshll.u32 %s1939_s21, 4  ;;  %s1854_s15 = int_to_ptr.vmem [resolvable:$false] %s1853_s15 }
  0x55   : > { %s1855_s19 = scalar_lea.vmem %s1854_s15, 2048  ;;  %p1856_p4 = scmp.lt.s32.totalorder %s2121_s11, %s1854_s15 }
  0x56   : > { %p1851_p2 = pnand %p1849_p12, %p1835_p0  ;;  %p1857_p13 = scmp.lt.s32.totalorder %s1855_s19, %s1848_s18 }
  0x58   : > { %p1852_p5 = pneg %p1851_p2  ;;  %p1858_p6 = por %p1857_p13, %p1856_p4 }
  0x5a   : > { %p1859_p10 = pnand %p1858_p6, %p1852_p5 }
  0x5c   : > { %1862 = shalt.err (!%p1859_p10)
}
  0x5d   : > { %s1940_s12 = smov 128   ;;  %s1941_s14 = smov 8  }
  0x5e   : > { %1677 = dma.hbm_to_vmem [thread:$0]  (!%p2123_p11), %s2119_s20, 1024, %s2121_s11, %s2127_s10, %s1940_s12, %s1940_s12, %s1941_s14  }
  0x5f   : > { %282 = sbr.rel (%p2026_p8) target bundleno = 644 (0x284), region = 48  ;;  %s2158_s23 = sand.u32 (!%p2026_p8), 1, %s1925_s25  }
  0x60   : > { %s1437_s29 = sshll.u32 (!%p2026_p8), %s2158_s23, 6  ;;  %s285_s18 = scalar_lea.sflag (!%p2026_p8), [#allocation4], %s2158_s23 }
  0x61   : > { %s2164_s21 = scalar_lea.vmem (!%p2026_p8), [#allocation3], %s1437_s29  ;;  %p2390_p4 = scmp.ne.s32.totalorder (!%p2026_p8), %s2383_s30, 0 }
  0x66   : > { %1908 = dma.done.wait (%p2390_p4), %s285_s18, 1024  }
  0x67   : > { %1910 = vsyncadd (%p2390_p4), %s285_s18, 4294966272  ;;  %p2391_p5 = scmp.eq.s32.totalorder %s2007_s28, 0 }
  0x69   : > { %1912 = dma.done.wait (%p2391_p5), [#allocation7], 6144   ;;  %p2392_p8 = pmov %p2391_p5 }
  0x6a   : > { %v1942_v0 = vmov 0.0   ;;  %v1729_v1 = vld [vmem:[#allocation6 + $0x40] sm:$0xff]   ;;  %v1732_v4 = vld [vmem:[#allocation6 + $0x48] sm:$0xff]   ;;  %v1735_v7 = vld [vmem:[#allocation6 + $0x50] sm:$0xff]   ;;  %vm386_vm0 = vcmask 1046528   ;;  %vm354_vm1 = vcmask 1040384  }
  0x6b   : > { %1914 = vsyncadd (%p2392_p8), [#allocation7], 4294961152  ;;  %418 = vst [vmem:[#allocation2] sm:$0x1] %v1942_v0  ;;  %v1730_v2 = vld [vmem:[#allocation6 + $0x80] sm:$0xff]   ;;  %1503 = vmatprep.subr.bf16.mxu0 %v1729_v1  ;;  %v1733_v5 = vld [vmem:[#allocation6 + $0x88] sm:$0xff]  }
  0x6c   : > { %425 = vst [vmem:[#allocation2 + $0xbf] sm:$0x1] %v1942_v0  ;;  %v1731_v3 = vld [vmem:[#allocation6] sm:$0xff]   ;;  %1607 = vmatprep.subr.bf16.mxu1 %v1730_v2  ;;  %v1734_v6 = vld [vmem:[#allocation6 + $0x8] sm:$0xff]   ;;  %v1736_v8 = vld [vmem:[#allocation6 + $0x90] sm:$0xff]   ;;  %s2307_s12 = scalar_lea.vmem [#allocation9], %s1437_s29 }
  0x6d   : > { %1504 = vmatpush3.bf16.msra.mxu0 %v1731_v3  ;;  %1608 = vmatpush3.bf16.msra.mxu1 %v1730_v2  ;;  %v1737_v9 = vld [vmem:[#allocation6 + $0x10] sm:$0xff]   ;;  %v1738_v10 = vld [vmem:[#allocation6 + $0x58] sm:$0xff]   ;;  %v1741_v13 = vld [vmem:[#allocation6 + $0x60] sm:$0xff]   ;;  %s1502_s14 = sshll.u32 %s2007_s28, 10  ;;  %s1335_s29 = sshll.u32 %s2307_s12, 4  ;;  %s2325_s29 = int_to_ptr.vmem [resolvable:$true] %s1335_s29 }
  0x6e   : > { %1505 = vmatprep.subr.bf16.mxu0 %v1732_v4  ;;  %1609 = vmatprep.subr.bf16.mxu1 %v1733_v5  ;;  %v1739_v11 = vld [vmem:[#allocation6 + $0x98] sm:$0xff]   ;;  %v1742_v14 = vld [vmem:[#allocation6 + $0xa0] sm:$0xff]   ;;  %v1744_v16 = vld [vmem:[#allocation6 + $0x68] sm:$0xff]   ;;  %s2323_s30 = scalar_lea.hbm %s2379_s7, %s1502_s14  ;;  %s1321_s28 = scalar_lea.sflag [#allocation5], %s2158_s23 }
  0x6f   : > { %v1740_v12 = vld [vmem:[#allocation6 + $0x18] sm:$0xff]   ;;  %v1743_v15 = vld [vmem:[#allocation6 + $0x20] sm:$0xff]   ;;  %v1745_v17 = vld [vmem:[#allocation6 + $0xa8] sm:$0xff]   ;;  %s1863_s9 = scalar_lea.vmem %s2325_s29, 1024  ;;  %p2393_p0 = scmp.ne.s32.totalorder %s2388_s16, 0 }
  0x70   : > { %v1746_v18 = vld [vmem:[#allocation6 + $0x28] sm:$0xff]   ;;  %v1747_v19 = vld [vmem:[#allocation6 + $0x70] sm:$0xff]   ;;  %v1750_v22 = vld [vmem:[#allocation6 + $0x78] sm:$0xff]   ;;  %p1864_p11 = scmp.ne.s32.totalorder %s2325_s29, %s1863_s9  ;;  %s1943_s20 = smov [#allocation9]  }
  0x71   : > { %1506 = vmatpush3.bf16.msra.mxu0 %v1734_v6  ;;  %1610 = vmatpush3.bf16.msra.mxu1 %v1733_v5  ;;  %v1748_v20 = vld [vmem:[#allocation6 + $0xb0] sm:$0xff]   ;;  %v1751_v23 = vld [vmem:[#allocation6 + $0xb8] sm:$0xff]   ;;  %v2177_v24 = vld [vmem:[%s2164_s21] sm:$0xff]  ;;  %s1867_s11 = sshll.u32 %s1943_s20, 4  ;;  %s1868_s11 = int_to_ptr.vmem [resolvable:$false] %s1867_s11 }
  0x72   : > { %1507 = vmatprep.subr.bf16.mxu0 %v1735_v7  ;;  %1611 = vmatprep.subr.bf16.mxu1 %v1736_v8  ;;  %v1749_v21 = vld [vmem:[#allocation6 + $0x30] sm:$0xff]   ;;  %v2180_v25 = vld [vmem:[%s2164_s21 + $0x8] sm:$0xff]  ;;  %v2190_v30 = vld [vmem:[%s2164_s21 + $0x18] sm:$0xff]  ;;  %v355_v35 = vrot.slane %v2177_v24, 7  ;;  %v387_v48 = vrot.slane %v2177_v24, 1  ;;  %p1865_p1 = pnand %p1864_p11, %p2393_p0  ;;  %s1869_s22 = scalar_lea.vmem %s1868_s11, 2048 }
  0x73   : > { %v2183_v26 = vld [vmem:[%s2164_s21 + $0x10] sm:$0xff]  ;;  %v356_v27 = vrot.slane %v2180_v25, 7  ;;  %v451_v28 = vpack.c.bf16 %v2180_v25, %v2177_v24  ;;  %v388_v29 = vrot.slane %v2180_v25, 1  ;;  %v2193_v31 = vld [vmem:[%s2164_s21 + $0x20] sm:$0xff]  ;;  %v2196_v32 = vld [vmem:[%s2164_s21 + $0x28] sm:$0xff]  ;;  %v392_v36 = vrot.slane %v2190_v30, 1  ;;  %p1870_p7 = scmp.lt.s32.totalorder %s2325_s29, %s1868_s11  ;;  %p1871_p9 = scmp.lt.s32.totalorder %s1869_s22, %s1863_s9 }
  0x74   : > { %v1752_v33 = vld [vmem:[#allocation6 + $0x38] sm:$0xff]   ;;  %v390_v34 = vrot.slane %v2183_v26, 1  ;;  %v394_v37 = vrot.slane %v2193_v31, 1  ;;  %v2203_v38 = vld [vmem:[%s2164_s21 + $0x30] sm:$0xff]  ;;  %v358_v39 = vrot.slane %v2183_v26, 7  ;;  %v360_v42 = vrot.slane %v2190_v30, 7  ;;  %p1866_p3 = pneg %p1865_p1 }
  0x75   : > { %1508 = vmatpush3.bf16.msra.mxu0 %v1737_v9  ;;  %1612 = vmatpush3.bf16.msra.mxu1 %v1736_v8  ;;  %v2207_v40 = vld [vmem:[%s2164_s21 + $0x38] sm:$0xff]  ;;  %378 = vst [vmem:[#allocation2] sm:$0xfe] %v355_v35  ;;  %v396_v43 = vrot.slane %v2196_v32, 1  ;;  %v398_v46 = vrot.slane %v2203_v38, 1  ;;  %v1753_v47 = vld [vmem:[#allocation8 + $0x40] sm:$0xff]   ;;  %v357_v55 = vsel %vm354_vm1, %v355_v35, %v356_v27  ;;  %v389_v59 = vsel %vm386_vm0, %v387_v48, %v388_v29  ;;  %p1872_p12 = por %p1871_p9, %p1870_p7 }
  0x76   : > { %1509 = vmatprep.subr.bf16.mxu0 %v1738_v10  ;;  %1613 = vmatprep.subr.bf16.mxu1 %v1739_v11  ;;  %v391_v41 = vsel %vm386_vm0, %v388_v29, %v390_v34  ;;  %v395_v44 = vsel %vm386_vm0, %v392_v36, %v394_v37  ;;  %v359_v45 = vsel %vm354_vm1, %v356_v27, %v358_v39  ;;  %v400_v49 = vrot.slane %v2207_v40, 1  ;;  %v1754_v57 = vld [vmem:[#allocation8] sm:$0xff]   ;;  %v1755_v58 = vld [vmem:[#allocation8 + $0x48] sm:$0xff]   ;;  %v1757_v27 = vld [vmem:[#allocation8 + $0x50] sm:$0xff]  }
  0x77   : > { %686 = vmatprep.mubr.bf16.mxu0 %v451_v28  ;;  %411 = vst [vmem:[#allocation2 + $0x28] sm:$0xff] %v391_v41  ;;  %413 = vst [vmem:[#allocation2 + $0x58] sm:$0xff] %v395_v44  ;;  %v362_v50 = vrot.slane %v2193_v31, 7  ;;  %v399_v51 = vsel %vm386_vm0, %v396_v43, %v398_v46  ;;  %v364_v52 = vrot.slane %v2196_v32, 7  ;;  %v366_v53 = vrot.slane %v2203_v38, 7  ;;  %v1756_v2 = vld [vmem:[#allocation8 + $0x8] sm:$0xff]   ;;  %p1873_p2 = pnand %p1872_p12, %p1866_p3 }
  0x78   : > { %419 = vst [vmem:[#allocation2 + $0x2f] sm:$0x1] %v1942_v0  ;;  %380 = vst [vmem:[#allocation2 + $0x30] sm:$0xff] %v359_v45  ;;  %v454_v61 = vpack.c.bf16 %v2190_v30, %v2183_v26  ;;  %v393_v63 = vsel %vm386_vm0, %v390_v34, %v392_v36  ;;  %v397_v6 = vsel %vm386_vm0, %v394_v37, %v396_v43  ;;  %v1758_v28 = vld [vmem:[#allocation8 + $0x10] sm:$0xff]   ;;  %v1759_v29 = vld [vmem:[#allocation8 + $0x58] sm:$0xff]  }
  0x79   : > { %1510 = vmatpush3.bf16.msra.mxu0 %v1740_v12  ;;  %1614 = vmatpush3.bf16.msra.mxu1 %v1739_v11  ;;  %421 = vst [vmem:[#allocation2 + $0x5f] sm:$0x1] %v1942_v0  ;;  %420 = vst [vmem:[#allocation2 + $0x30] sm:$0x1] %v1942_v0  ;;  %v363_v54 = vsel %vm354_vm1, %v360_v42, %v362_v50  ;;  %v367_v56 = vsel %vm354_vm1, %v364_v52, %v366_v53  ;;  %v1761_v34 = vld [vmem:[#allocation8 + $0x60] sm:$0xff]   ;;  %v1764_v37 = vld [vmem:[#allocation8 + $0x68] sm:$0xff]  }
  0x7a   : > { %1511 = vmatprep.subr.bf16.mxu0 %v1741_v13  ;;  %1615 = vmatprep.subr.bf16.mxu1 %v1742_v14  ;;  %415 = vst [vmem:[#allocation2 + $0x88] sm:$0xff] %v399_v51  ;;  %417 = vst [vmem:[#allocation2 + $0xb8] sm:$0x7f] %v400_v49  ;;  %v361_v8 = vsel %vm354_vm1, %v358_v39, %v360_v42  ;;  %v401_v13 = vsel %vm386_vm0, %v398_v46, %v400_v49  ;;  %v1763_v35 = vld [vmem:[#allocation8 + $0x20] sm:$0xff]   ;;  %v1766_v39 = vld [vmem:[#allocation8 + $0x28] sm:$0xff]  }
  0x7b   : > { %423 = vst [vmem:[#allocation2 + $0x8f] sm:$0x1] %v1942_v0  ;;  %382 = vst [vmem:[#allocation2 + $0x60] sm:$0xff] %v363_v54  ;;  %v1762_v36 = vld [vmem:[#allocation8 + $0x80] sm:$0xff]   ;;  %v1765_v41 = vld [vmem:[#allocation8 + $0x88] sm:$0xff]  }
  0x7c   : > { %422 = vst [vmem:[#allocation2 + $0x60] sm:$0x1] %v1942_v0  ;;  %384 = vst [vmem:[#allocation2 + $0x90] sm:$0xff] %v367_v56  ;;  %v426_v60 = vld [vmem:[#allocation2] sm:$0xff]  ;;  %v1767_v42 = vld [vmem:[#allocation8 + $0x70] sm:$0xff]  }
  0x7d   : > { %1512 = vmatpush3.bf16.msra.mxu0 %v1743_v15  ;;  %1616 = vmatpush3.bf16.msra.mxu1 %v1742_v14  ;;  %424 = vst [vmem:[#allocation2 + $0x90] sm:$0x1] %v1942_v0  ;;  %v450_v62 = vpack.c.bf16 %v357_v55, %v426_v60  ;;  %900 = vst [vmem:[#allocation2] sm:$0x1] %v1942_v0  ;;  %v457_v14 = vpack.c.bf16 %v2196_v32, %v2193_v31  ;;  %v1769_v43 = vld [vmem:[#allocation8 + $0x30] sm:$0xff]   ;;  %v1770_v45 = vld [vmem:[#allocation8 + $0x78] sm:$0xff]  }
  0x7e   : > { %1513 = vmatprep.subr.bf16.mxu0 %v1744_v16  ;;  %1617 = vmatprep.subr.bf16.mxu1 %v1745_v17  ;;  %v1768_v44 = vld [vmem:[#allocation8 + $0x90] sm:$0xff]   ;;  %v1772_v46 = vld [vmem:[#allocation8 + $0x38] sm:$0xff]   ;;  %v1773_v48 = vld [vmem:[#allocation8 + $0xa0] sm:$0xff]  }
  0x7f   : > { %v431_v1 = vld [vmem:[#allocation2 + $0x28] sm:$0xff]  ;;  %v1776_v51 = vld [vmem:[#allocation8 + $0xb8] sm:$0xff]  }
  0x80   : > { %v452_v3 = vpack.c.bf16 %v431_v1, %v389_v59  ;;  %v437_v4 = vld [vmem:[#allocation2 + $0x58] sm:$0xff]  ;;  %v432_v5 = vld [vmem:[#allocation2 + $0x30] sm:$0xff]  ;;  %v1774_v49 = vld [vmem:[#allocation8 + $0xa8] sm:$0xff]  }
  0x81   : > { %1514 = vmatpush3.bf16.msra.mxu0 %v1746_v18  ;;  %1618 = vmatpush3.bf16.msra.mxu1 %v1745_v17  ;;  %v455_v7 = vpack.c.bf16 %v437_v4, %v393_v63  ;;  %v449_v9 = vld [vmem:[#allocation2 + $0xb8] sm:$0xff]  ;;  %v453_v12 = vpack.c.bf16 %v361_v8, %v432_v5  ;;  %v365_v17 = vsel %vm354_vm1, %v362_v50, %v364_v52  ;;  %v1775_v50 = vld [vmem:[#allocation8 + $0xb0] sm:$0xff]   ;;  %v2249_v59 = vld [vmem:[%s2374_s2] ss:$0 sm:$0xff] }
  0x82   : > { %1515 = vmatprep.subr.bf16.mxu0 %v1747_v19  ;;  %1619 = vmatprep.subr.bf16.mxu1 %v1748_v20  ;;  %v443_v10 = vld [vmem:[#allocation2 + $0x88] sm:$0xff]  ;;  %907 = vst [vmem:[#allocation2 + $0xbf] sm:$0x1] %v1942_v0  ;;  %v461_v15 = vpack.c.bf16 %v449_v9, %v401_v13  ;;  %v460_v19 = vpack.c.bf16 %v2207_v40, %v2203_v38  ;;  %v2254_v63 = vld [vmem:[%s2375_s3] ss:$0 sm:$0xff] }
  0x83   : > { %1623 = vmatprep.mubr.bf16.mxu1 %v452_v3  ;;  %v458_v11 = vpack.c.bf16 %v443_v10, %v397_v6  ;;  %v438_v16 = vld [vmem:[#allocation2 + $0x60] sm:$0xff] }
  0x84   : > { %v456_v18 = vpack.c.bf16 %v365_v17, %v438_v16 }
  0x85   : > { %1516 = vmatpush3.bf16.msra.mxu0 %v1749_v21  ;;  %1620 = vmatpush3.bf16.msra.mxu1 %v1748_v20  ;;  %v368_v20 = vrot.slane %v2207_v40, 7 }
  0x86   : > { %1517 = vmatprep.subr.bf16.mxu0 %v1750_v22  ;;  %1621 = vmatprep.subr.bf16.mxu1 %v1751_v23  ;;  %v444_v22 = vld [vmem:[#allocation2 + $0x90] sm:$0xff] }
  0x87   : > { %v369_v21 = vsel %vm354_vm1, %v366_v53, %v368_v20 }
  0x89   : > { %1518 = vmatpush3.bf16.msra.mxu0 %v1752_v33  ;;  %1622 = vmatpush3.bf16.msra.mxu1 %v1751_v23  ;;  %v459_v23 = vpack.c.bf16 %v369_v21, %v444_v22  ;;  %v1760_v33 = vld [vmem:[#allocation8 + $0x18] sm:$0xff]  }
  0x8a   : > { %1555 = vmatprep.subr.bf16.mxu0 %v1753_v47  ;;  %1631 = vmatprep.subr.bf16.mxu1 %v1762_v36  ;;  %v1771_v47 = vld [vmem:[#allocation8 + $0x98] sm:$0xff]  }
  0x8c   : > { %687 = vmatmul.mubr.bf16.vlgmr.msra.gmra.mrb[0].mxu0 %v450_v62  ;;  %1624 = vmatmul.mubr.bf16.vlgmr.msra.gmra.mrb[0].mxu1 %v455_v7 }
  0x8d   : > { %694 = vmatprep.mubr.bf16.mxu0 %v454_v61  ;;  %1556 = vmatpush3.bf16.msra.mxu0 %v1754_v57 }
  0x8e   : > { %1557 = vmatprep.subr.bf16.mxu0 %v1755_v58  ;;  %1627 = vmatprep.mubr.bf16.mxu1 %v458_v11 }
  0x8f   : > { %1632 = vmatpush3.bf16.msra.mxu1 %v1762_v36 }
  0x90   : > { %1633 = vmatprep.subr.bf16.mxu1 %v1765_v41 }
  0x91   : > { %1558 = vmatpush3.bf16.msra.mxu0 %v1756_v2 }
  0x92   : > { %1559 = vmatprep.subr.bf16.mxu0 %v1757_v27 }
  0x93   : > { %1634 = vmatpush3.bf16.msra.mxu1 %v1765_v41 }
  0x94   : > { %695 = vmatmul.mubr.bf16.gmra.mrb[4].mxu0 %v453_v12  ;;  %1628 = vmatmul.mubr.bf16.gmra.mrb[4].mxu1 %v461_v15 }
  0x95   : > { %702 = vmatprep.mubr.bf16.mxu0 %v457_v14  ;;  %1560 = vmatpush3.bf16.msra.mxu0 %v1758_v28 }
  0x96   : > { %1561 = vmatprep.subr.bf16.mxu0 %v1759_v29  ;;  %1635 = vmatprep.subr.bf16.mxu1 %v1768_v44 }
  0x97   : > { %1636 = vmatpush3.bf16.msra.mxu1 %v1768_v44 }
  0x98   : > { %1637 = vmatprep.subr.bf16.mxu1 %v1771_v47 }
  0x99   : > { %1562 = vmatpush3.bf16.msra.mxu0 %v1760_v33 }
  0x9a   : > { %1563 = vmatprep.subr.bf16.mxu0 %v1761_v34 }
  0x9b   : > { %1638 = vmatpush3.bf16.msra.mxu1 %v1771_v47 }
  0x9c   : > { %703 = vmatmul.mubr.bf16.gmra.mrb[8].mxu0 %v456_v18  ;;  %1639 = vmatprep.subr.bf16.mxu1 %v1773_v48 }
  0x9d   : > { %710 = vmatprep.mubr.bf16.mxu0 %v460_v19  ;;  %1564 = vmatpush3.bf16.msra.mxu0 %v1763_v35 }
  0x9e   : > { %1565 = vmatprep.subr.bf16.mxu0 %v1764_v37 }
  0x9f   : > { %1640 = vmatpush3.bf16.msra.mxu1 %v1773_v48 }
  0xa0   : > { %1641 = vmatprep.subr.bf16.mxu1 %v1774_v49 }
  0xa1   : > { %1566 = vmatpush3.bf16.msra.mxu0 %v1766_v39 }
  0xa2   : > { %1567 = vmatprep.subr.bf16.mxu0 %v1767_v42 }
  0xa3   : > { %1642 = vmatpush3.bf16.msra.mxu1 %v1774_v49 }
  0xa4   : > { %711 = vmatmul.mubr.bf16.gmra.mrb[12].mxu0 %v459_v23  ;;  %1643 = vmatprep.subr.bf16.mxu1 %v1775_v50 }
  0xa5   : > { %1568 = vmatpush3.bf16.msra.mxu0 %v1769_v43 }
  0xa6   : > { %1569 = vmatprep.subr.bf16.mxu0 %v1770_v45 }
  0xa7   : > { %1644 = vmatpush3.bf16.msra.mxu1 %v1775_v50 }
  0xa8   : > { %1645 = vmatprep.subr.bf16.mxu1 %v1776_v51 }
  0xa9   : > { %1570 = vmatpush3.bf16.msra.mxu0 %v1772_v46 }
  0xab   : > { %1646 = vmatpush3.bf16.msra.mxu1 %v1776_v51 }
 0x15f   : > { %v1519_v52 = vpop.f32.mrb[0].mxu0  ;;  %v1625_v56 = vpop.f32.mrb[0].mxu1 }
 0x160   : > { %v1520_v53 = vpop.f32.mrb[1].mxu0  ;;  %v753_v58 = vpop.f32.mrb[1].mxu1 }
 0x161   : > { %v1521_v54 = vadd.f32 %v1520_v53, %v1519_v52  ;;  %v1522_v55 = vpop.f32.mrb[2].mxu0  ;;  %v1626_v62 = vpop.f32.mrb[2].mxu1 }
 0x162   : > { %v1523_v57 = vpop.f32.mrb[3].mxu0  ;;  %v756_v1 = vpop.f32.mrb[3].mxu1 }
 0x163   : > { %v1524_v60 = vadd.f32 %v1523_v57, %v1522_v55  ;;  %v754_v61 = vadd.f32 %v1521_v54, %v753_v58 }
 0x165   : > { %v791_v2 = vmul.f32 %v2249_v59, %v754_v61  ;;  %v757_v3 = vadd.f32 %v1524_v60, %v756_v1 }
 0x167   : > { %v1525_v4 = vpop.f32.mrb[4].mxu0  ;;  %v806_v5 = vadd.f32 %v2254_v63, %v791_v2  ;;  %v792_v6 = vmul.f32 %v2249_v59, %v757_v3  ;;  %v1629_v13 = vpop.f32.mrb[4].mxu1 }
 0x168   : > { %v1526_v7 = vpop.f32.mrb[5].mxu0  ;;  %v769_v16 = vpop.f32.mrb[5].mxu1 }
 0x169   : > { %v1527_v8 = vadd.f32 %v1526_v7, %v1525_v4  ;;  %v1528_v9 = vpop.f32.mrb[6].mxu0  ;;  %v814_v10 = vmax.f32 %v806_v5, 0.0  ;;  %v807_v11 = vadd.f32 %v2254_v63, %v792_v6  ;;  %v1630_v19 = vpop.f32.mrb[6].mxu1 }
 0x16a   : > { %v1529_v12 = vpop.f32.mrb[7].mxu0  ;;  %v772_v22 = vpop.f32.mrb[7].mxu1 }
 0x16b   : > { %v762_v14 = vadd.f32 %v1625_v56, %v1527_v8  ;;  %v1530_v15 = vadd.f32 %v1529_v12, %v1528_v9  ;;  %v838_v17 = vrot.slane %v814_v10, 7  ;;  %v815_v18 = vmax.f32 %v807_v11, 0.0 }
 0x16c   : > { %v869_v23 = vrot.slane %v814_v10, 1 }
 0x16d   : > { %v793_v20 = vmul.f32 %v2249_v59, %v762_v14  ;;  %v765_v21 = vadd.f32 %v1626_v62, %v1530_v15  ;;  %861 = vst [vmem:[#allocation2] sm:$0xfe] %v838_v17  ;;  %v839_v27 = vrot.slane %v815_v18, 7  ;;  %v870_v28 = vrot.slane %v815_v18, 1 }
 0x16e   : > { %v933_v29 = vpack.c.bf16 %v815_v18, %v814_v10 }
 0x16f   : > { %v808_v33 = vadd.f32 %v2254_v63, %v793_v20  ;;  %v794_v34 = vmul.f32 %v2249_v59, %v765_v21  ;;  %v1531_v35 = vpop.f32.mrb[8].mxu0  ;;  %v840_v36 = vsel %vm354_vm1, %v838_v17, %v839_v27  ;;  %v2265_v37 = vsel %vm386_vm0, %v869_v23, %v870_v28 }
 0x170   : > { %v1532_v39 = vpop.f32.mrb[9].mxu0  ;;  %1168 = vmatprep.mubr.bf16.mxu0 %v933_v29 }
 0x171   : > { %v816_v41 = vmax.f32 %v808_v33, 0.0  ;;  %v809_v42 = vadd.f32 %v2254_v63, %v794_v34  ;;  %v1533_v43 = vadd.f32 %v1532_v39, %v1531_v35  ;;  %v1534_v44 = vpop.f32.mrb[10].mxu0 }
 0x172   : > { %v1535_v45 = vpop.f32.mrb[11].mxu0 }
 0x173   : > { %v841_v46 = vrot.slane %v816_v41, 7  ;;  %v872_v47 = vrot.slane %v816_v41, 1  ;;  %v817_v48 = vmax.f32 %v809_v42, 0.0  ;;  %v770_v49 = vadd.f32 %v1533_v43, %v769_v16 }
 0x174   : > { %v1536_v50 = vadd.f32 %v1535_v45, %v1534_v44  ;;  %v908_v55 = vld [vmem:[#allocation2] sm:$0xff] }
 0x175   : > { %v842_v51 = vsel %vm354_vm1, %v839_v27, %v841_v46  ;;  %v873_v52 = vsel %vm386_vm0, %v870_v28, %v872_v47  ;;  %v843_v53 = vrot.slane %v817_v48, 7  ;;  %v874_v54 = vrot.slane %v817_v48, 1 }
 0x176   : > { %863 = vst [vmem:[#allocation2 + $0x30] sm:$0xff] %v842_v51  ;;  %893 = vst [vmem:[#allocation2 + $0x28] sm:$0xff] %v873_v52  ;;  %v795_v56 = vmul.f32 %v2249_v59, %v770_v49  ;;  %v773_v57 = vadd.f32 %v1536_v50, %v772_v22  ;;  %v932_v58 = vpack.c.bf16 %v840_v36, %v908_v55 }
 0x177   : > { %v936_v60 = vpack.c.bf16 %v817_v48, %v816_v41  ;;  %901 = vst [vmem:[#allocation2 + $0x2f] sm:$0x1] %v1942_v0  ;;  %902 = vst [vmem:[#allocation2 + $0x30] sm:$0x1] %v1942_v0  ;;  %v844_v61 = vsel %vm354_vm1, %v841_v46, %v843_v53  ;;  %v875_v62 = vsel %vm386_vm0, %v872_v47, %v874_v54  ;;  %v1537_v1 = vpop.f32.mrb[12].mxu0 }
 0x178   : > { %v810_v2 = vadd.f32 %v2254_v63, %v795_v56  ;;  %v796_v3 = vmul.f32 %v2249_v59, %v773_v57  ;;  %v1538_v4 = vpop.f32.mrb[13].mxu0  ;;  %1169 = vmatmul.mubr.bf16.vlgmr.msra.gmra.mrb[16].mxu0 %v932_v58 }
 0x179   : > { %v1539_v5 = vadd.f32 %v1538_v4, %v1537_v1  ;;  %v1540_v6 = vpop.f32.mrb[14].mxu0  ;;  %1176 = vmatprep.mubr.bf16.mxu0 %v936_v60 }
 0x17a   : > { %v818_v7 = vmax.f32 %v810_v2, 0.0  ;;  %v811_v8 = vadd.f32 %v2254_v63, %v796_v3  ;;  %v1541_v9 = vpop.f32.mrb[15].mxu0 }
 0x17b   : > { %v778_v10 = vadd.f32 %v1629_v13, %v1539_v5  ;;  %v1542_v11 = vadd.f32 %v1541_v9, %v1540_v6  ;;  %v1491_v9 = vld [vmem:[%s2377_s5] ss:$0 sm:$0xff] }
 0x17c   : > { %v845_v12 = vrot.slane %v818_v7, 7  ;;  %v876_v14 = vrot.slane %v818_v7, 1  ;;  %v819_v15 = vmax.f32 %v811_v8, 0.0 }
 0x17d   : > { %v797_v16 = vmul.f32 %v2249_v59, %v778_v10  ;;  %v781_v17 = vadd.f32 %v1630_v19, %v1542_v11 }
 0x17e   : > { %v846_v18 = vsel %vm354_vm1, %v843_v53, %v845_v12  ;;  %v877_v20 = vsel %vm386_vm0, %v874_v54, %v876_v14  ;;  %v847_v21 = vrot.slane %v819_v15, 7  ;;  %v878_v22 = vrot.slane %v819_v15, 1  ;;  %v913_v23 = vld [vmem:[#allocation2 + $0x28] sm:$0xff]  ;;  %v914_v27 = vld [vmem:[#allocation2 + $0x30] sm:$0xff] }
 0x17f   : > { %865 = vst [vmem:[#allocation2 + $0x60] sm:$0xff] %v846_v18  ;;  %895 = vst [vmem:[#allocation2 + $0x58] sm:$0xff] %v877_v20  ;;  %v812_v28 = vadd.f32 %v2254_v63, %v797_v16  ;;  %v798_v13 = vmul.f32 %v2249_v59, %v781_v17  ;;  %v934_v29 = vpack.c.bf16 %v913_v23, %v2265_v37 }
 0x180   : > { %v935_v33 = vpack.c.bf16 %v844_v61, %v914_v27  ;;  %903 = vst [vmem:[#allocation2 + $0x5f] sm:$0x1] %v1942_v0  ;;  %904 = vst [vmem:[#allocation2 + $0x60] sm:$0x1] %v1942_v0  ;;  %v848_v19 = vsel %vm354_vm1, %v845_v12, %v847_v21  ;;  %v879_v34 = vsel %vm386_vm0, %v876_v14, %v878_v22 }
 0x181   : > { %v939_v35 = vpack.c.bf16 %v819_v15, %v818_v7  ;;  %v820_v36 = vmax.f32 %v812_v28, 0.0  ;;  %v813_v39 = vadd.f32 %v2254_v63, %v798_v13  ;;  %1647 = vmatprep.mubr.bf16.mxu1 %v934_v29  ;;  %v1492_v15 = vld [vmem:[%s2378_s6] ss:$0 sm:$0xff] }
 0x182   : > { %1177 = vmatmul.mubr.bf16.gmra.mrb[20].mxu0 %v935_v33 }
 0x183   : > { %1184 = vmatprep.mubr.bf16.mxu0 %v939_v35  ;;  %v849_v41 = vrot.slane %v820_v36, 7  ;;  %v880_v59 = vrot.slane %v820_v36, 1  ;;  %v821_v42 = vmax.f32 %v813_v39, 0.0 }
 0x185   : > { %v850_v37 = vsel %vm354_vm1, %v847_v21, %v849_v41  ;;  %v881_v43 = vsel %vm386_vm0, %v878_v22, %v880_v59  ;;  %v851_v44 = vrot.slane %v821_v42, 7  ;;  %v882_v45 = vrot.slane %v821_v42, 1 }
 0x186   : > { %867 = vst [vmem:[#allocation2 + $0x90] sm:$0xff] %v850_v37  ;;  %897 = vst [vmem:[#allocation2 + $0x88] sm:$0xff] %v881_v43  ;;  %v942_v46 = vpack.c.bf16 %v821_v42, %v820_v36 }
 0x187   : > { %905 = vst [vmem:[#allocation2 + $0x8f] sm:$0x1] %v1942_v0  ;;  %906 = vst [vmem:[#allocation2 + $0x90] sm:$0x1] %v1942_v0  ;;  %v852_v63 = vsel %vm354_vm1, %v849_v41, %v851_v44  ;;  %v883_v47 = vsel %vm386_vm0, %v880_v59, %v882_v45  ;;  %v919_v48 = vld [vmem:[#allocation2 + $0x58] sm:$0xff]  ;;  %v920_v49 = vld [vmem:[#allocation2 + $0x60] sm:$0xff] }
 0x188   : > { %899 = vst [vmem:[#allocation2 + $0xb8] sm:$0x7f] %v882_v45  ;;  %v937_v50 = vpack.c.bf16 %v919_v48, %v875_v62  ;;  %v938_v51 = vpack.c.bf16 %v848_v19, %v920_v49 }
 0x18a   : > { %1648 = vmatmul.mubr.bf16.vlgmr.msra.gmra.mrb[8].mxu1 %v937_v50  ;;  %1185 = vmatmul.mubr.bf16.gmra.mrb[24].mxu0 %v938_v51 }
 0x18b   : > { %1192 = vmatprep.mubr.bf16.mxu0 %v942_v46 }
 0x18e   : > { %v925_v52 = vld [vmem:[#allocation2 + $0x88] sm:$0xff]  ;;  %v926_v53 = vld [vmem:[#allocation2 + $0x90] sm:$0xff] }
 0x18f   : > { %v931_v54 = vld [vmem:[#allocation2 + $0xb8] sm:$0xff]  ;;  %v940_v55 = vpack.c.bf16 %v925_v52, %v879_v34  ;;  %v941_v56 = vpack.c.bf16 %v852_v63, %v926_v53 }
 0x190   : > { %v943_v57 = vpack.c.bf16 %v931_v54, %v883_v47 }
 0x191   : > { %1651 = vmatprep.mubr.bf16.mxu1 %v940_v55 }
 0x192   : > { %1193 = vmatmul.mubr.bf16.gmra.mrb[28].mxu0 %v941_v56  ;;  %1652 = vmatmul.mubr.bf16.gmra.mrb[12].mxu1 %v943_v57 }
 0x24b   : > { %v1571_v0 = vpop.f32.mrb[16].mxu0 }
 0x24c   : > { %v1572_v58 = vpop.f32.mrb[17].mxu0 }
 0x24d   : > { %v1573_v60 = vadd.f32 %v1572_v58, %v1571_v0  ;;  %v1574_v61 = vpop.f32.mrb[18].mxu0 }
 0x24e   : > { %v1575_v1 = vpop.f32.mrb[19].mxu0 }
 0x24f   : > { %v1576_v2 = vadd.f32 %v1575_v1, %v1574_v61 }
 0x255   : > { %v1577_v62 = vpop.f32.mrb[20].mxu0 }
 0x256   : > { %v1578_v3 = vpop.f32.mrb[21].mxu0 }
 0x257   : > { %v1579_v4 = vadd.f32 %v1578_v3, %v1577_v62  ;;  %v1580_v5 = vpop.f32.mrb[22].mxu0 }
 0x258   : > { %v1581_v6 = vpop.f32.mrb[23].mxu0 }
 0x259   : > { %v1582_v7 = vadd.f32 %v1581_v6, %v1580_v5 }
 0x25d   : > { %v1649_v8 = vpop.f32.mrb[8].mxu1  ;;  %v1583_v10 = vpop.f32.mrb[24].mxu0 }
 0x25e   : > { %v1244_v11 = vadd.f32 %v1649_v8, %v1579_v4  ;;  %v1235_v12 = vpop.f32.mrb[9].mxu1  ;;  %v1584_v14 = vpop.f32.mrb[25].mxu0 }
 0x25f   : > { %v1236_v16 = vadd.f32 %v1573_v60, %v1235_v12  ;;  %v1585_v17 = vadd.f32 %v1584_v14, %v1583_v10  ;;  %v1650_v18 = vpop.f32.mrb[10].mxu1  ;;  %v1586_v20 = vpop.f32.mrb[26].mxu0 }
 0x260   : > { %v1275_v21 = vmul.f32 %v1491_v9, %v1244_v11  ;;  %v1247_v22 = vadd.f32 %v1650_v18, %v1582_v7  ;;  %v1238_v23 = vpop.f32.mrb[11].mxu1  ;;  %v1587_v27 = vpop.f32.mrb[27].mxu0 }
 0x261   : > { %v1273_v28 = vmul.f32 %v1491_v9, %v1236_v16  ;;  %v1239_v13 = vadd.f32 %v1576_v2, %v1238_v23  ;;  %v1588_v29 = vadd.f32 %v1587_v27, %v1586_v20 }
 0x262   : > { %v1290_v33 = vadd.f32 %v1492_v15, %v1275_v21  ;;  %v1276_v19 = vmul.f32 %v1491_v9, %v1247_v22 }
 0x263   : > { %v1288_v34 = vadd.f32 %v1492_v15, %v1273_v28  ;;  %v1274_v35 = vmul.f32 %v1491_v9, %v1239_v13 }
 0x264   : > { %v1298_v36 = vadd.f32 %v1290_v33, %v2183_v26  ;;  %v1291_v39 = vadd.f32 %v1492_v15, %v1276_v19 }
 0x265   : > { %v1296_v41 = vadd.f32 %v1288_v34, %v2177_v24  ;;  %v1289_v59 = vadd.f32 %v1492_v15, %v1274_v35  ;;  %v1589_v42 = vpop.f32.mrb[28].mxu0  ;;  %v1653_v37 = vpop.f32.mrb[12].mxu1 }
 0x266   : > { %v1306_v43 = vmax.f32 %v1298_v36, 0.0  ;;  %v1299_v44 = vadd.f32 %v1291_v39, %v2190_v30  ;;  %v1590_v45 = vpop.f32.mrb[29].mxu0  ;;  %v1251_v46 = vpop.f32.mrb[13].mxu1 }
 0x267   : > { %v1304_v63 = vmax.f32 %v1296_v41, 0.0  ;;  %v1297_v47 = vadd.f32 %v1289_v59, %v2180_v25  ;;  %v1591_v48 = vadd.f32 %v1590_v45, %v1589_v42  ;;  %v1252_v49 = vadd.f32 %v1585_v17, %v1251_v46  ;;  %v1592_v50 = vpop.f32.mrb[30].mxu0  ;;  %v1654_v51 = vpop.f32.mrb[14].mxu1 }
 0x268   : > { %1314 = vst [vmem:[%s2307_s12 + $0x10] sm:$0xff] %v1306_v43  ;;  %v1307_v24 = vmax.f32 %v1299_v44, 0.0  ;;  %v1593_v26 = vpop.f32.mrb[31].mxu0  ;;  %v1254_v30 = vpop.f32.mrb[15].mxu1 }
 0x269   : > { %1312 = vst [vmem:[%s2307_s12] sm:$0xff] %v1304_v63  ;;  %v1305_v52 = vmax.f32 %v1297_v47, 0.0  ;;  %v1260_v53 = vadd.f32 %v1653_v37, %v1591_v48  ;;  %v1277_v54 = vmul.f32 %v1491_v9, %v1252_v49  ;;  %v1594_v25 = vadd.f32 %v1593_v26, %v1592_v50 }
 0x26a   : > { %1315 = vst [vmem:[%s2307_s12 + $0x18] sm:$0xff] %v1307_v24  ;;  %v1255_v55 = vadd.f32 %v1588_v29, %v1254_v30 }
 0x26b   : > { %1313 = vst [vmem:[%s2307_s12 + $0x8] sm:$0xff] %v1305_v52  ;;  %v1279_v56 = vmul.f32 %v1491_v9, %v1260_v53  ;;  %v1292_v57 = vadd.f32 %v1492_v15, %v1277_v54  ;;  %v1263_v0 = vadd.f32 %v1654_v51, %v1594_v25 }
 0x26c   : > { %v1278_v58 = vmul.f32 %v1491_v9, %v1255_v55 }
 0x26d   : > { %v1294_v60 = vadd.f32 %v1492_v15, %v1279_v56  ;;  %v1300_v61 = vadd.f32 %v1292_v57, %v2193_v31  ;;  %v1280_v1 = vmul.f32 %v1491_v9, %v1263_v0 }
 0x26e   : > { %v1293_v2 = vadd.f32 %v1492_v15, %v1278_v58 }
 0x26f   : > { %v1302_v62 = vadd.f32 %v1294_v60, %v2203_v38  ;;  %v1308_v3 = vmax.f32 %v1300_v61, 0.0  ;;  %v1295_v4 = vadd.f32 %v1492_v15, %v1280_v1 }
 0x270   : > { %v1301_v5 = vadd.f32 %v1293_v2, %v2196_v32 }
 0x271   : > { %v1310_v6 = vmax.f32 %v1302_v62, 0.0  ;;  %1316 = vst [vmem:[%s2307_s12 + $0x20] sm:$0xff] %v1308_v3  ;;  %v1303_v7 = vadd.f32 %v1295_v4, %v2207_v40 }
 0x272   : > { %v1309_v8 = vmax.f32 %v1301_v5, 0.0 }
 0x273   : > { %1318 = vst [vmem:[%s2307_s12 + $0x30] sm:$0xff] %v1310_v6  ;;  %v1311_v31 = vmax.f32 %v1303_v7, 0.0 }
 0x274   : > { %1317 = vst [vmem:[%s2307_s12 + $0x28] sm:$0xff] %v1309_v8 }
 0x275   : > { %1319 = vst [vmem:[%s2307_s12 + $0x38] sm:$0xff] %v1311_v31 }
 0x276   : > { %1876 = shalt.err (!%p1873_p2)
}
 0x277   : > { %s1877_s10 = scalar_lea.hbm %s2323_s30, 1024  ;;  %s1881_s12 = scalar_lea.hbm %s2379_s7, 2048 }
 0x278   : > { %p1878_p13 = scmp.ne.s32.totalorder %s2323_s30, %s1877_s10  ;;  %p1882_p4 = scmp.lt.u32.totalorder %s2323_s30, %s2379_s7 }
 0x279   : > { %p1883_p5 = scmp.lt.u32.totalorder %s1881_s12, %s1877_s10  ;;  %p1885_p11 = scmp.lt.u32.totalorder %s1877_s10, %s2323_s30 }
 0x27a   : > { %p1879_p6 = pnand %p1878_p13, %p2393_p0 }
 0x27b   : > { %p1884_p8 = por %p1883_p5, %p1882_p4 }
 0x27c   : > { %p1880_p10 = pneg %p1879_p6 }
 0x27d   : > { %p1886_p1 = por %p1885_p11, %p1884_p8 }
 0x27f   : > { %p1887_p3 = pnand %p1886_p1, %p1880_p10 }
 0x281   : > { %1890 = shalt.err (!%p1887_p3)
}
 0x282   : > { %s1944_s21 = smov 128   ;;  %s1945_s9 = smov 8  }
 0x283   : > { %1665 = dma.vmem_to_hbm [thread:$0]  (%p2393_p0), %s2325_s29, 1024, %s2323_s30, %s1321_s28, %s1944_s21, %s1944_s21, %s1945_s9  }
 0x284 PF: > { %s1350_s20 = sand.u32 1, %s1921_s24   ;;  %p2394_p7 = scmp.ne.s32.totalorder %s2384_s8, 0 }
 0x285   : > { %p2395_p9 = scmp.ge.s32.totalorder %s1933_s27, 2  ;;  %s1351_s11 = scalar_lea.sflag [#allocation5], %s1350_s20 }
 0x287   : > { %p1679_p12 = pnand %p2395_p9, %p2394_p7 }
 0x289   : > { %1916 = dma.done.wait (!%p1679_p12), %s1351_s11, 1024  }
 0x28a   : > { %1918 = vsyncadd (!%p1679_p12), %s1351_s11, 4294966272  ;;  %p21_p2 = scmp.ge.s32.totalorder %s2096_s13, 4   ;;  %s2396_s24 = smov %s1925_s25 }
 0x28b   : > { %s2397_s25 = smov %s1929_s26  ;;  %s2398_s26 = smov %s2112_s17 }
 0x28c   : > { %s2399_s27 = smov %s2096_s13  ;;  %23 = sbr.rel (!%p21_p2) target bundleno = 6 (0x6), region = 101 }
 0x293   :  { %1356 = vsyncpa [#allocation4], 1 }
 0x294   :  { %1358 = vsyncpa [#allocation4 + $0x1], 1 }
 0x295   :  { %1359 = vsyncpa [#allocation7], 1 }
 0x296   :  { %1360 = vsyncpa [#allocation5], 1 }
 0x297   :  { %1362 = vsyncpa [#allocation5 + $0x1], 1 }

</bundles_post_ra>
